<compile_context>
chip_gen: v5e
topology: v5e:2x2
jax: 0.10.0
libtpu: 0.0.40
codegen_flags: <defaults>
</compile_context>

<pallas_src>
import functools

import jax
import jax.numpy as jnp
from jax.experimental import pallas as pl
from jax.experimental.pallas import tpu as pltpu

_LANE = 128  # lane width / output-column padding


def _round_up(x, m):
    return ((x + m - 1) // m) * m


def _chip_settings():
    """Static, Python-time chip-aware tuning knobs."""
    try:
        kind = jax.devices()[0].device_kind.lower()
    except Exception:  # pragma: no cover - defensive
        kind = ""
    is_v6 = "v6" in kind
    is_v7 = "v7" in kind
    # bf16 VPU/EUP only on v6e / v7x; elsewhere keep the elementwise math f32.
    bf16_math = is_v6 or is_v7
    if is_v6:
        tm_max = 1024                      # 128 MiB physical VMEM, raise limit
        vmem_limit = 64 * 1024 * 1024
    elif is_v7:
        tm_max = 512                       # 64 MiB physical VMEM, keep G >= 2
        vmem_limit = None
    else:                                  # v5e / v5p / older / unknown
        tm_max = 512                       # stays well inside 16 MiB scoped
        vmem_limit = None
    return tm_max, vmem_limit, bf16_math, is_v7


_TM_MAX, _VMEM_LIMIT, _BF16_MATH, _IS_V7 = _chip_settings()


def _gelu_tanh(x):
    """tanh-approx GELU.  |err vs exact erf GELU| <~ 1e-3 (below bf16 noise).

    1 EUP tanh + ~7 VALU ops per element; runs in x.dtype (bf16 on v6e/v7x).
    """
    c = 0.7978845608028654  # sqrt(2/pi)
    return 0.5 * x * (1.0 + jnp.tanh(c * (x + 0.044715 * (x * x * x))))


def _gelu_exact_f32(x):
    """nn.GELU() default (erf form).  Abramowitz & Stegun 7.1.26 erf approx
    (|err| < 1.5e-7); reciprocal goes to the EUP slot via approx=True."""
    a1 = 0.254829592
    a2 = -0.284496736
    a3 = 1.421413741
    a4 = -1.453152027
    a5 = 1.061405429
    p = 0.3275911
    z = x * 0.7071067811865476             # x / sqrt(2)
    sign = jnp.where(z >= 0.0, 1.0, -1.0)
    az = jnp.abs(z)
    t = pl.reciprocal(1.0 + p * az, approx=True)
    poly = ((((a5 * t + a4) * t + a3) * t + a2) * t + a1) * t
    erf = sign * (1.0 - poly * jnp.exp(-az * az))
    return 0.5 * x * (1.0 + erf)


def _bce_with_logits(x, y):
    # Numerically stable BCEWithLogitsLoss per element (PyTorch semantics).
    # log(1+exp(-|x|)) == log1p(exp(-|x|)) to within <1e-7 absolute (the gap
    # only matters for |x|>16 where the term itself is negligible).
    return jnp.maximum(x, 0.0) - x * y + jnp.log(1.0 + jnp.exp(-jnp.abs(x)))


def qa_head_kernel(n_valid, bf16_math, exact_gelu,
                   h_ref, w_ref, b_ref, y_ref, logits_ref, loss_ref):
    """One row tile: GELU -> Linear -> lane-dense logits + partial BCE sum.

    h_ref:      (TM, H)   activations (native dtype, e.g. bf16)
    w_ref:      (H, 128)  qa_span weight in bf16, zero-padded past column 1
    b_ref:      (1, 128)  qa_span bias in f32,    zero-padded past column 1
    y_ref:      (2, TM)   labels, row 0 = starts, row 1 = ends (lane-dense)
    logits_ref: (2, TM)   output logits, same layout
    loss_ref:   (1, 1, 1) per-tile partial sum of start+end BCE
    """
    i = pl.program_id(0)
    tm = h_ref.shape[0]

    h = h_ref[...]
    use_bf16 = bf16_math and h.dtype == jnp.bfloat16 and not exact_gelu
    if not use_bf16:
        h = h.astype(jnp.float32)

    if exact_gelu:
        g = _gelu_exact_f32(h)             # exact erf form, f32
    else:
        g = _gelu_tanh(h)                  # bf16 on v6e/v7x, f32 elsewhere

    # bf16 MXU operands, f32 accumulation; only columns 0/1 are real outputs.
    lf = jnp.dot(g.astype(jnp.bfloat16), w_ref[...],
                 preferred_element_type=jnp.float32) + b_ref[...]

    # Cast before the XLU transpose: half the vregs through the VEX slot.
    lt = jnp.transpose(lf.astype(jnp.bfloat16))[0:2, :].astype(jnp.float32)
    logits_ref[...] = lt                   # (2, TM) lane-dense

    bce = _bce_with_logits(lt, y_ref[...])                    # (2, TM)
    # Mask lanes past the true token count (row padding added by the wrapper).
    lane = jax.lax.broadcasted_iota(jnp.int32, bce.shape, 1) + i * tm
    bce = jnp.where(lane < n_valid, bce, 0.0)
    loss_ref[...] = jnp.sum(bce).reshape(1, 1, 1)             # partial sum


@functools.partial(jax.jit, static_argnames=("exact_gelu",))
def qa_task_forward(encoded, w_qa, b_qa, starts, ends, exact_gelu=False):
    """encoded: (B, S, H) backbone output (bf16 or f32).

    Returns (loss, start_pos, end_pos) with start/end_pos shaped (B, S),
    matching the PyTorch module's forward.
    """
    B, S, H = encoded.shape
    N = B * S

    n_pad128 = _round_up(N, _LANE)
    TM = min(_TM_MAX, n_pad128)
    if _IS_V7 and n_pad128 // TM < 2 and n_pad128 >= 2 * _LANE:
        # Keep >= 2 grid steps so the ("parallel",) axis can shard across the
        # two v7x TensorCores.
        TM = _round_up(n_pad128 // 2, _LANE)
    N_pad = _round_up(N, TM)
    G = N_pad // TM

    # Flatten tokens; keep native dtype (bf16 halves the HBM read bytes).
    h2d = encoded.reshape(N, H)
    if N_pad != N:
        h2d = jnp.pad(h2d, ((0, N_pad - N), (0, 0)))

    # Lane-dense labels: (2, N_pad), row 0 = starts, row 1 = ends.
    labels = jnp.stack([starts.reshape(-1), ends.reshape(-1)],
                       axis=0).astype(jnp.float32)
    if N_pad != N:
        labels = jnp.pad(labels, ((0, 0), (0, N_pad - N)))

    # Pad the (H, 2) weight / (2,) bias to 128 output columns so the matmul
    # result and its transpose are tile-aligned.  Weight in bf16 (MXU operand),
    # bias stays f32 and is added after the f32-accumulated matmul.
    w_pad = jnp.zeros((H, _LANE), jnp.bfloat16).at[:, :2].set(
        w_qa.astype(jnp.bfloat16))
    b_pad = jnp.zeros((1, _LANE), jnp.float32).at[0, :2].set(
        b_qa.astype(jnp.float32))

    h_bytes = jnp.dtype(h2d.dtype).itemsize
    gelu_flops = 24 if exact_gelu else 8
    cost = pl.CostEstimate(
        flops=int(2 * N_pad * H * _LANE + gelu_flops * N_pad * H + 16 * N_pad),
        transcendentals=int(N_pad * H + 4 * N_pad),
        bytes_accessed=int(N_pad * H * h_bytes            # activations in
                           + H * _LANE * 2 + _LANE * 4    # weight + bias
                           + 2 * N_pad * 4                # labels in
                           + 2 * N_pad * 4 + G * 4),      # logits + partials out
    )

    logits, loss_parts = pl.pallas_call(
        functools.partial(qa_head_kernel, N, _BF16_MATH, exact_gelu),
        grid=(G,),
        in_specs=[
            pl.BlockSpec((TM, H), lambda i: (i, 0)),        # activations (tiled)
            pl.BlockSpec((H, _LANE), lambda i: (0, 0)),     # weight (resident)
            pl.BlockSpec((1, _LANE), lambda i: (0, 0)),     # bias   (resident)
            pl.BlockSpec((2, TM), lambda i: (0, i)),        # labels (lane-dense)
        ],
        out_specs=(
            pl.BlockSpec((2, TM), lambda i: (0, i)),        # logits (lane-dense)
            pl.BlockSpec((1, 1, 1), lambda i: (i, 0, 0)),   # partial loss sums
        ),
        out_shape=(
            jax.ShapeDtypeStruct((2, N_pad), jnp.float32),
            jax.ShapeDtypeStruct((G, 1, 1), jnp.float32),
        ),
        compiler_params=pltpu.CompilerParams(
            dimension_semantics=("parallel",),              # megacore sharding
            vmem_limit_bytes=_VMEM_LIMIT),
        cost_estimate=cost,
    )(h2d, w_pad, b_pad, labels)

    # mean(start BCE) + mean(end BCE) == sum(partials) / N  (global N, not TM).
    loss = jnp.sum(loss_parts) * (1.0 / N)
    start_pos = logits[0, :N].reshape(B, S)
    end_pos = logits[1, :N].reshape(B, S)
    return loss, start_pos, end_pos


def reference_forward(encoded, w_qa, b_qa, starts, ends):
    g = jax.nn.gelu(encoded.astype(jnp.float32), approximate=False)
    logits = jnp.einsum("bsh,ho->bso", g, w_qa) + b_qa
    s, e = logits[..., 0], logits[..., 1]

    def bce_mean(x, y):
        x, y = x.reshape(-1), y.reshape(-1)
        per = jnp.maximum(x, 0.0) - x * y + jnp.log1p(jnp.exp(-jnp.abs(x)))
        return jnp.mean(per)

    loss = bce_mean(s, starts) + bce_mean(e, ends)
    return loss, s, e


if __name__ == "__main__":
    # Small shapes consistent with the module's forward: (bs, seq, hidden).
    B, S, H, VOCAB = 2, 8, 32, 64

    key = jax.random.PRNGKey(0)
    k_tok, k_seg, k_in, k_sg, k_w, k_b, k_st, k_en = jax.random.split(key, 8)

    # Deterministic parameters.
    tok_emb = jax.random.normal(k_tok, (VOCAB, H), jnp.float32) * 0.02
    seg_emb = jax.random.normal(k_seg, (2, H), jnp.float32) * 0.02
    bound = 1.0 / jnp.sqrt(H)
    w_qa = jax.random.uniform(k_w, (H, 2), jnp.float32, -bound, bound)
    b_qa = jax.random.uniform(k_b, (2,), jnp.float32, -bound, bound)

    # Synthetic batch: data['inputs'], data['segments'], data['starts'], data['ends'].
    inputs = jax.random.randint(k_in, (B, S), 0, VOCAB)
    segments = jax.random.randint(k_sg, (B, S), 0, 2)
    starts = jax.random.bernoulli(k_st, 0.15, (B, S)).astype(jnp.float32)
    ends = jax.random.bernoulli(k_en, 0.15, (B, S)).astype(jnp.float32)

    # Stand-in backbone (plain JAX glue): output = self.model(inputs, segments).
    encoded = (tok_emb[inputs] + seg_emb[segments]) * 8.0          # (B, S, H)
    # Feed the head its native bf16 activations (halves HBM bytes).
    encoded_bf16 = encoded.astype(jnp.bfloat16)

    # Pure-JAX reference of the same head (exact GELU, f32 matmul).
    ref_loss, ref_s, ref_e = reference_forward(
        encoded_bf16.astype(jnp.float32), w_qa, b_qa, starts, ends)

    # Default fast path (tanh GELU, bf16 math on v6e/v7x, bf16 MXU operands).
    loss, start_pos, end_pos = qa_task_forward(
        encoded_bf16, w_qa, b_qa, starts, ends)
    jax.block_until_ready((loss, start_pos, end_pos))
    assert jnp.allclose(loss, ref_loss, rtol=3e-3, atol=3e-3), (loss, ref_loss)
    assert jnp.allclose(start_pos, ref_s, rtol=3e-3, atol=3e-3)
    assert jnp.allclose(end_pos, ref_e, rtol=3e-3, atol=3e-3)

    # Exact erf-GELU path (nn.GELU() default semantics).
    loss_e, s_e, e_e = qa_task_forward(
        encoded_bf16, w_qa, b_qa, starts, ends, exact_gelu=True)
    jax.block_until_ready((loss_e, s_e, e_e))
    assert jnp.allclose(loss_e, ref_loss, rtol=3e-3, atol=3e-3), (loss_e, ref_loss)
    assert jnp.allclose(s_e, ref_s, rtol=3e-3, atol=3e-3)
    assert jnp.allclose(e_e, ref_e, rtol=3e-3, atol=3e-3)

    print("KERNEL_OK")
</pallas_src>

<mosaic_0001>
module attributes {stable_mosaic.version = 11 : i64} {
  func.func @qa_head_kernel(%arg0: i32, %arg1: memref<128x32xbf16, #tpu.memory_space<vmem>>, %arg2: memref<32x128xbf16, #tpu.memory_space<vmem>>, %arg3: memref<1x128xf32, #tpu.memory_space<vmem>>, %arg4: memref<2x128xf32, #tpu.memory_space<vmem>>, %arg5: memref<2x128xf32, #tpu.memory_space<vmem>>, %arg6: memref<1x1x1xf32, #tpu.memory_space<vmem>>) attributes {dimension_semantics = [#tpu.dimension_semantics<parallel>], iteration_bounds = array<i64: 1>, scalar_prefetch = 0 : i64, scratch_operands = 0 : i64, tpu.core_type = #tpu.core_type<tc>, window_params = [{transform_indices = @transform_0, window_bounds = array<i64: 128, 32>}, {pipeline_mode = #tpu.pipeline_mode<synchronous>, transform_indices = @transform_1, window_bounds = array<i64: 32, 128>}, {pipeline_mode = #tpu.pipeline_mode<synchronous>, transform_indices = @transform_2, window_bounds = array<i64: 1, 128>}, {transform_indices = @transform_3, window_bounds = array<i64: 2, 128>}, {transform_indices = @transform_4, window_bounds = array<i64: 2, 128>}, {transform_indices = @transform_5, window_bounds = array<i64: 1, 1, 1>}]} {
    %c0 = arith.constant 0 : index
    %c0_0 = arith.constant 0 : index
    %0 = vector.load %arg1[%c0, %c0_0] : memref<128x32xbf16, #tpu.memory_space<vmem>>, vector<128x32xbf16>
    %1 = arith.extf %0 : vector<128x32xbf16> to vector<128x32xf32>
    %cst = arith.constant 5.000000e-01 : f32
    %2 = vector.broadcast %cst : f32 to vector<128x32xf32>
    %3 = arith.mulf %2, %1 : vector<128x32xf32>
    %4 = arith.mulf %1, %1 : vector<128x32xf32>
    %5 = arith.mulf %4, %1 : vector<128x32xf32>
    %cst_1 = arith.constant 4.471500e-02 : f32
    %6 = vector.broadcast %cst_1 : f32 to vector<128x32xf32>
    %7 = arith.mulf %6, %5 : vector<128x32xf32>
    %8 = arith.addf %1, %7 : vector<128x32xf32>
    %cst_2 = arith.constant 0.797884583 : f32
    %9 = vector.broadcast %cst_2 : f32 to vector<128x32xf32>
    %10 = arith.mulf %9, %8 : vector<128x32xf32>
    %11 = math.tanh %10 : vector<128x32xf32>
    %cst_3 = arith.constant 1.000000e+00 : f32
    %12 = vector.broadcast %cst_3 : f32 to vector<128x32xf32>
    %13 = arith.addf %12, %11 : vector<128x32xf32>
    %14 = arith.mulf %3, %13 : vector<128x32xf32>
    %15 = arith.truncf %14 : vector<128x32xf32> to vector<128x32xbf16>
    %c0_4 = arith.constant 0 : index
    %c0_5 = arith.constant 0 : index
    %16 = vector.load %arg2[%c0_4, %c0_5] : memref<32x128xbf16, #tpu.memory_space<vmem>>, vector<32x128xbf16>
    %cst_6 = arith.constant dense<0.000000e+00> : vector<128x128xf32>
    %17 = tpu.matmul %15, %16, %cst_6 {dimension_numbers = #tpu.dot_dimension_numbers<[1], [0], [0], [1], [0, 0, 1, 1], [], []>} : vector<128x32xbf16>, vector<32x128xbf16>, vector<128x128xf32> -> vector<128x128xf32>
    %c0_7 = arith.constant 0 : index
    %c0_8 = arith.constant 0 : index
    %18 = vector.load %arg3[%c0_7, %c0_8] : memref<1x128xf32, #tpu.memory_space<vmem>>, vector<1x128xf32>
    %19 = vector.broadcast %18 : vector<1x128xf32> to vector<128x128xf32>
    %20 = arith.addf %17, %19 : vector<128x128xf32>
    %21 = arith.truncf %20 : vector<128x128xf32> to vector<128x128xbf16>
    %22 = tpu.transpose %21, [1, 0] : vector<128x128xbf16> -> vector<128x128xbf16>
    %23 = vector.extract_strided_slice %22 {offsets = [0, 0], sizes = [2, 128], strides = [1, 1]} : vector<128x128xbf16> to vector<2x128xbf16>
    %24 = arith.extf %23 : vector<2x128xbf16> to vector<2x128xf32>
    %c0_9 = arith.constant 0 : index
    %c0_10 = arith.constant 0 : index
    %25 = vector.load %arg5[%c0_9, %c0_10] : memref<2x128xf32, #tpu.memory_space<vmem>>, vector<2x128xf32>
    tpu.vector_store %arg5[%c0_9, %c0_10], %24 {strides = array<i32>} : memref<2x128xf32, #tpu.memory_space<vmem>>, vector<2x128xf32>,
    %c0_11 = arith.constant 0 : index
    %c0_12 = arith.constant 0 : index
    %26 = vector.load %arg4[%c0_11, %c0_12] : memref<2x128xf32, #tpu.memory_space<vmem>>, vector<2x128xf32>
    %cst_13 = arith.constant 0.000000e+00 : f32
    %27 = vector.broadcast %cst_13 : f32 to vector<2x128xf32>
    %28 = arith.maximumf %24, %27 : vector<2x128xf32>
    %29 = arith.mulf %24, %26 : vector<2x128xf32>
    %30 = arith.subf %28, %29 : vector<2x128xf32>
    %31 = math.absf %24 : vector<2x128xf32>
    %cst_14 = arith.constant 0.000000e+00 : f32
    %32 = vector.broadcast %cst_14 : f32 to vector<2x128xf32>
    %33 = arith.subf %32, %31 : vector<2x128xf32>
    %34 = math.exp %33 : vector<2x128xf32>
    %cst_15 = arith.constant 1.000000e+00 : f32
    %35 = vector.broadcast %cst_15 : f32 to vector<2x128xf32>
    %36 = arith.addf %35, %34 : vector<2x128xf32>
    %37 = math.log %36 : vector<2x128xf32>
    %38 = arith.addf %30, %37 : vector<2x128xf32>
    %39 = tpu.iota {dimensions = array<i32: 1>} : vector<2x128xi32>
    %c128_i32 = arith.constant 128 : i32
    %40 = arith.muli %arg0, %c128_i32 : i32
    %41 = vector.broadcast %40 : i32 to vector<2x128xi32>
    %42 = arith.addi %39, %41 : vector<2x128xi32>
    %c16_i32 = arith.constant 16 : i32
    %43 = vector.broadcast %c16_i32 : i32 to vector<2x128xi32>
    %44 = arith.cmpi slt, %42, %43 : vector<2x128xi32>
    %cst_16 = arith.constant 0.000000e+00 : f32
    %45 = vector.broadcast %cst_16 : f32 to vector<2x128xf32>
    %46 = arith.select %44, %38, %45 : vector<2x128xi1>, vector<2x128xf32>
    %47 = vector.shape_cast %46 : vector<2x128xf32> to vector<1x2x128xf32>
    %cst_17 = arith.constant dense<0.000000e+00> : vector<1xf32>
    %48 = vector.multi_reduction <add>, %47, %cst_17 [1, 2] : vector<1x2x128xf32> to vector<1xf32>
    %49 = vector.shape_cast %48 : vector<1xf32> to vector<1x1x1xf32>
    %50 = vector.extract %49[0, 0, 0] : f32 from vector<1x1x1xf32>
    %51 = vector.broadcast %50 : f32 to vector<1x1x1xf32>
    %c0_18 = arith.constant 0 : index
    %c0_19 = arith.constant 0 : index
    %c0_20 = arith.constant 0 : index
    %52 = vector.load %arg6[%c0_18, %c0_19, %c0_20] : memref<1x1x1xf32, #tpu.memory_space<vmem>>, vector<1x1x1xf32>
    tpu.vector_store %arg6[%c0_18, %c0_19, %c0_20], %51 {strides = array<i32>} : memref<1x1x1xf32, #tpu.memory_space<vmem>>, vector<1x1x1xf32>,
    return
  }
  func.func @transform_0(%arg0: i32) -> (i32, i32) {
    %c0_i32 = arith.constant 0 : i32
    %c0_i32_0 = arith.constant 0 : i32
    return %arg0, %c0_i32 : i32, i32
  }
  func.func @transform_1(%arg0: i32) -> (i32, i32) {
    %c0_i32 = arith.constant 0 : i32
    %c0_i32_0 = arith.constant 0 : i32
    %c0_i32_1 = arith.constant 0 : i32
    return %c0_i32, %c0_i32_0 : i32, i32
  }
  func.func @transform_2(%arg0: i32) -> (i32, i32) {
    %c0_i32 = arith.constant 0 : i32
    %c0_i32_0 = arith.constant 0 : i32
    %c0_i32_1 = arith.constant 0 : i32
    return %c0_i32, %c0_i32_0 : i32, i32
  }
  func.func @transform_3(%arg0: i32) -> (i32, i32) {
    %c0_i32 = arith.constant 0 : i32
    %c0_i32_0 = arith.constant 0 : i32
    return %c0_i32, %arg0 : i32, i32
  }
  func.func @transform_4(%arg0: i32) -> (i32, i32) {
    %c0_i32 = arith.constant 0 : i32
    %c0_i32_0 = arith.constant 0 : i32
    return %c0_i32, %arg0 : i32, i32
  }
  func.func @transform_5(%arg0: i32) -> (i32, i32, i32) {
    %c0_i32 = arith.constant 0 : i32
    %c0_i32_0 = arith.constant 0 : i32
    %c0_i32_1 = arith.constant 0 : i32
    return %arg0, %c0_i32, %c0_i32_0 : i32, i32, i32
  }
}

</mosaic_0001>

<bundles_post_ra>
// kernel: squeeze.3
= control target key start
LH: loop header
LB: loop body
LE: loop exit
PB: predicated region body
PF: predicated region fallthrough
CT: control target
= control target key end

     0   :  { %s80_s0 = inlined_call_operand.vmem [shape: f32[16], index: 0, kind: input, shape index: {}]   ;;  %s81_s1 = inlined_call_operand.hbm [shape: f32[2,8], index: 1, kind: output, shape index: {}]  }
   0x1   :  { %v5_v0 = vld [vmem:[%s80_s0] sm:$0x1] }
   0x2   :  { %2 = vsyncpa [#allocation1], 0  ;;  %6 = vst [vmem:[#allocation3] sm:$0x1] %v5_v0  ;;  %vm8_vm0 = vcmask 64512   ;;  %s62_s0 = smov 120  }
   0x3   :  { %s63_s8 = smov [#allocation0]   ;;  %s27_s1 = sshll.u32 %s81_s1, 4  ;;  %s28_s1 = int_to_ptr.hbm [resolvable:$true] %s27_s1 }
   0x4   :  { %s25_s9 = sshll.u32 %s63_s8, 4  ;;  %s26_s9 = int_to_ptr.vmem [resolvable:$true] %s25_s9 }
   0x9   :  { %v10_v1 = vld [vmem:[#allocation3] sm:$0x1]  }
   0xa   :  { %v7_v2 = vld [vmem:[#allocation3] sm:$0x1]   ;;  %11 = vrot.lane.b32.xlu0 %v10_v1, %s62_s0 }
   0xb   :  { %9 = vst.msk [vmem:[#allocation2] sm:$0x1] %vm8_vm0, %v7_v2  }
  0x7c   :  { %v12_v3 = vpop.permute.xlu0 %11  }
  0x7d   :  { %15 = vst.msk [vmem:[#allocation2 + $0x1] sm:$0x1] %vm8_vm0, %v12_v3  }
  0x84   :  { %v18_v4 = vld [vmem:[#allocation2] sm:$0x3] }
  0x85   :  { %21 = vst [vmem:[#allocation0] sm:$0x3] %v18_v4 }
  0x86   :  { %30 = dma.vmem_to_hbm [thread:$0]  %s26_s9, 32, %s28_s1, [#allocation1]  }
  0x87   :  { %60 = dma.done.wait [#allocation1], 32  }
  0x88   :  { %61 = vsyncadd [#allocation1], 4294967264 }
  0x89   :  { %33 = vsyncpa [#allocation1], 1 }

// kernel: qa_task_forward.1
= control target key start
LH: loop header
LB: loop body
LE: loop exit
PB: predicated region body
PF: predicated region fallthrough
CT: control target
= control target key end

     0   :  { %s686_s0 = inlined_call_operand.vmem [shape: bf16[128,32], index: 0, kind: input, shape index: {}]   ;;  %s687_s1 = inlined_call_operand.vmem [shape: bf16[32,128], index: 1, kind: input, shape index: {}]   ;;  %s688_s2 = inlined_call_operand.vmem [shape: f32[1,128], index: 2, kind: input, shape index: {}]   ;;  %s689_s3 = inlined_call_operand.vmem [shape: f32[2,128], index: 3, kind: input, shape index: {}]   ;;  %s690_s4 = inlined_call_operand.vmem [shape: f32[2,128], index: 4, kind: output, shape index: {0}]   ;;  %s691_s5 = inlined_call_operand.hbm [shape: f32[1,1,1], index: 5, kind: output, shape index: {1}]  }
   0x1   :  { %v395_v0 = vld [vmem:[%s687_s1 + $0x8] sm:$0xff]  ;;  %v397_v1 = vld [vmem:[%s686_s0] sm:$0xff]   ;;  %v429_v5 = vld [vmem:[%s686_s0 + $0x10] sm:$0xff]  }
   0x2   :  { %v398_v2 = vunpack.c.l.bf16 %v397_v1  ;;  %v544_v3 = vunpack.c.h.bf16 %v397_v1  ;;  %v428_v4 = vld [vmem:[%s686_s0 + $0x8] sm:$0xff]   ;;  %256 = vmatpush.bf16.msra.mxu0 %v395_v0  ;;  %v394_v6 = vld [vmem:[%s687_s1] sm:$0xff]  ;;  %435 = vmatpush.bf16.msra.mxu1 %v395_v0  ;;  %v559_v9 = vunpack.c.l.bf16 %v429_v5  ;;  %v561_v10 = vunpack.c.h.bf16 %v429_v5 }
   0x3   :  { %v555_v7 = vunpack.c.l.bf16 %v428_v4  ;;  %v557_v8 = vunpack.c.h.bf16 %v428_v4 }
   0x4   :  { %11 = vsyncpa [#allocation3], 0  ;;  %v69_v11 = vmul.f32 %v398_v2, %v398_v2  ;;  %v70_v12 = vmul.f32 %v544_v3, %v544_v3  ;;  %436 = vmatpush.bf16.msra.mxu2 %v395_v0  ;;  %437 = vmatpush.bf16.msra.mxu3 %v395_v0  ;;  %v73_v17 = vmul.f32 %v559_v9, %v559_v9  ;;  %v430_v31 = vld [vmem:[%s686_s0 + $0x18] sm:$0xff]   ;;  %v431_v47 = vld [vmem:[%s686_s0 + $0x20] sm:$0xff]   ;;  %v53_v52 = vmul.f32 0.5, %v398_v2  ;;  %s367_s18 = sshll.u32 %s691_s5, 4  ;;  %s368_s18 = int_to_ptr.hbm [resolvable:$true] %s367_s18 }
   0x5   :  { %v71_v13 = vmul.f32 %v555_v7, %v555_v7  ;;  %v72_v14 = vmul.f32 %v557_v8, %v557_v8  ;;  %v74_v18 = vmul.f32 %v561_v10, %v561_v10  ;;  %v583_v33 = vunpack.c.l.bf16 %v430_v31  ;;  %v432_v48 = vld [vmem:[%s686_s0 + $0x28] sm:$0xff]  }
   0x6   :  { %v85_v15 = vmul.f32 %v398_v2, %v69_v11  ;;  %v86_v16 = vmul.f32 %v544_v3, %v70_v12  ;;  %257 = vmatpush.bf16.msra.mxu0 %v394_v6  ;;  %438 = vmatpush.bf16.msra.mxu1 %v394_v6  ;;  %v89_v23 = vmul.f32 %v559_v9, %v73_v17  ;;  %v585_v34 = vunpack.c.h.bf16 %v430_v31 }
   0x7   :  { %v87_v19 = vmul.f32 %v555_v7, %v71_v13  ;;  %v88_v20 = vmul.f32 %v557_v8, %v72_v14  ;;  %v90_v24 = vmul.f32 %v561_v10, %v74_v18  ;;  %v75_v41 = vmul.f32 %v583_v33, %v583_v33 }
   0x8   :  { %v101_v21 = vmul.f32 0.044715, %v85_v15  ;;  %v102_v22 = vmul.f32 0.044715, %v86_v16  ;;  %439 = vmatpush.bf16.msra.mxu2 %v394_v6  ;;  %440 = vmatpush.bf16.msra.mxu3 %v394_v6  ;;  %v105_v29 = vmul.f32 0.044715, %v89_v23  ;;  %v76_v44 = vmul.f32 %v585_v34, %v585_v34 }
   0x9   :  { %v103_v25 = vmul.f32 0.044715, %v87_v19  ;;  %v104_v26 = vmul.f32 0.044715, %v88_v20  ;;  %v106_v30 = vmul.f32 0.044715, %v90_v24  ;;  %v91_v46 = vmul.f32 %v583_v33, %v75_v41 }
   0xa   :  { %v117_v27 = vadd.f32 %v398_v2, %v101_v21  ;;  %v118_v28 = vadd.f32 %v544_v3, %v102_v22  ;;  %v121_v39 = vadd.f32 %v559_v9, %v105_v29  ;;  %v92_v49 = vmul.f32 %v585_v34, %v76_v44 }
   0xb   :  { %v119_v32 = vadd.f32 %v555_v7, %v103_v25  ;;  %v120_v37 = vadd.f32 %v557_v8, %v104_v26  ;;  %v122_v40 = vadd.f32 %v561_v10, %v106_v30  ;;  %v602_v50 = vunpack.c.l.bf16 %v431_v47 }
   0xc   :  { %v133_v35 = vmul.f32 0.7978846, %v117_v27  ;;  %v134_v36 = vmul.f32 0.7978846, %v118_v28  ;;  %v137_v42 = vmul.f32 0.7978846, %v121_v39  ;;  %v604_v51 = vunpack.c.h.bf16 %v431_v47 }
   0xd   :  { %v135_v38 = vmul.f32 0.7978846, %v119_v32  ;;  %v138_v43 = vmul.f32 0.7978846, %v122_v40  ;;  %v136_v45 = vmul.f32 0.7978846, %v120_v37  ;;  %v606_v55 = vunpack.c.l.bf16 %v432_v48 }
   0xe   :  { %445 = vtanh.f32 %v133_v35  ;;  %v107_v53 = vmul.f32 0.044715, %v91_v46  ;;  %v108_v54 = vmul.f32 0.044715, %v92_v49  ;;  %v608_v56 = vunpack.c.h.bf16 %v432_v48  ;;  %v433_v32 = vld [vmem:[%s686_s0 + $0x30] sm:$0xff]   ;;  %v434_v35 = vld [vmem:[%s686_s0 + $0x38] sm:$0xff]  }
   0xf   :  { %447 = vtanh.f32 %v134_v36  ;;  %v54_v58 = vmul.f32 0.5, %v544_v3  ;;  %v77_v60 = vmul.f32 %v602_v50, %v602_v50  ;;  %v78_v61 = vmul.f32 %v604_v51, %v604_v51 }
  0x10   :  { %449 = vtanh.f32 %v135_v38  ;;  %v123_v59 = vadd.f32 %v583_v33, %v107_v53  ;;  %v57_v0 = vmul.f32 0.5, %v559_v9  ;;  %v124_v1 = vadd.f32 %v585_v34, %v108_v54 }
  0x11   :  { %451 = vtanh.f32 %v137_v42  ;;  %v93_v5 = vmul.f32 %v602_v50, %v77_v60  ;;  %v94_v3 = vmul.f32 %v604_v51, %v78_v61  ;;  %v79_v13 = vmul.f32 %v606_v55, %v606_v55 }
  0x12   :  { %453 = vtanh.f32 %v138_v43  ;;  %v139_v4 = vmul.f32 0.7978846, %v123_v59  ;;  %v140_v12 = vmul.f32 0.7978846, %v124_v1  ;;  %v80_v14 = vmul.f32 %v608_v56, %v608_v56 }
  0x13   :  { %455 = vtanh.f32 %v136_v45  ;;  %vm225_vm0 = vcmask 261120   ;;  %v58_v9 = vmul.f32 0.5, %v561_v10  ;;  %v109_v17 = vmul.f32 0.044715, %v93_v5 }
  0x14   :  { %v446_v57 = vpop.eup %445  ;;  %v55_v19 = vmul.f32 0.5, %v555_v7  ;;  %457 = vtanh.f32 %v139_v4  ;;  %v110_v21 = vmul.f32 0.044715, %v94_v3  ;;  %v95_v28 = vmul.f32 %v606_v55, %v79_v13 }
  0x15   :  { %v448_v62 = vpop.eup %447  ;;  %v165_v63 = vadd.f32 1.0, %v446_v57  ;;  %459 = vtanh.f32 %v140_v12  ;;  %v125_v24 = vadd.f32 %v602_v50, %v109_v17  ;;  %v96_v10 = vmul.f32 %v608_v56, %v80_v14 }
  0x16   :  { %v166_v2 = vadd.f32 1.0, %v448_v62  ;;  %v450_v6 = vpop.eup %449  ;;  %v126_v27 = vadd.f32 %v604_v51, %v110_v21  ;;  %v56_v7 = vmul.f32 0.5, %v557_v8  ;;  %v111_v37 = vmul.f32 0.044715, %v95_v28 }
  0x17   :  { %v181_v11 = vmul.f32 %v165_v63, %v53_v52  ;;  %v452_v15 = vpop.eup %451  ;;  %v167_v29 = vadd.f32 1.0, %v450_v6  ;;  %v141_v31 = vmul.f32 0.7978846, %v125_v24  ;;  %v112_v38 = vmul.f32 0.044715, %v96_v10 }
  0x18   :  { %v182_v16 = vmul.f32 %v166_v2, %v54_v58  ;;  %v454_v18 = vpop.eup %453  ;;  %v169_v20 = vadd.f32 1.0, %v452_v15  ;;  %v142_v36 = vmul.f32 0.7978846, %v126_v27  ;;  %v422_v39 = vunpack.c.l.bf16 %v433_v32 }
  0x19   :  { %v170_v23 = vadd.f32 1.0, %v454_v18  ;;  %v456_v25 = vpop.eup %455  ;;  %461 = vtanh.f32 %v141_v31  ;;  %v638_v42 = vunpack.c.h.bf16 %v433_v32  ;;  %v127_v43 = vadd.f32 %v606_v55, %v111_v37 }
  0x1a   :  { %v197_v22 = vpack.c.bf16 %v182_v16, %v181_v11  ;;  %v185_v26 = vmul.f32 %v169_v20, %v57_v0  ;;  %v168_v40 = vadd.f32 1.0, %v456_v25  ;;  %v458_v8 = vpop.eup %457  ;;  %463 = vtanh.f32 %v142_v36 }
  0x1b   :  { %v186_v30 = vmul.f32 %v170_v23, %v58_v9  ;;  %v128_v44 = vadd.f32 %v608_v56, %v112_v38  ;;  %v642_v45 = vunpack.c.l.bf16 %v434_v35  ;;  %v460_v46 = vpop.eup %459  ;;  %v59_v47 = vmul.f32 0.5, %v583_v33 }
  0x1c   :  { %386 = vmatmul.msk.bf16.vlgmr.msra.gmra.mxu0 %vm225_vm0, %v197_v22  ;;  %v81_v48 = vmul.f32 %v422_v39, %v422_v39  ;;  %v183_v49 = vmul.f32 %v167_v29, %v55_v19  ;;  %v60_v52 = vmul.f32 0.5, %v585_v34  ;;  %v143_v53 = vmul.f32 0.7978846, %v127_v43 }
  0x1d   :  { %v199_v41 = vpack.c.bf16 %v186_v30, %v185_v26  ;;  %v82_v54 = vmul.f32 %v638_v42, %v638_v42  ;;  %v184_v57 = vmul.f32 %v168_v40, %v56_v7  ;;  %v144_v58 = vmul.f32 0.7978846, %v128_v44 }
  0x1e   :  { %v97_v59 = vmul.f32 %v422_v39, %v81_v48  ;;  %v649_v60 = vunpack.c.h.bf16 %v434_v35  ;;  %v61_v61 = vmul.f32 0.5, %v602_v50  ;;  %v62_v62 = vmul.f32 0.5, %v604_v51 }
  0x1f   :  { %388 = vmatmul.msk.bf16.vlgmr.msra.gmra.mxu1 %vm225_vm0, %v199_v41  ;;  %v98_v63 = vmul.f32 %v638_v42, %v82_v54  ;;  %v83_v33 = vmul.f32 %v642_v45, %v642_v45  ;;  %v462_v0 = vpop.eup %461  ;;  %v171_v34 = vadd.f32 1.0, %v458_v8  ;;  %v172_v1 = vadd.f32 1.0, %v460_v46 }
  0x20   :  { %465 = vtanh.f32 %v143_v53  ;;  %v113_v2 = vmul.f32 0.044715, %v97_v59  ;;  %v464_v4 = vpop.eup %463  ;;  %v173_v5 = vadd.f32 1.0, %v462_v0  ;;  %v84_v6 = vmul.f32 %v649_v60, %v649_v60 }
  0x21   :  { %v114_v3 = vmul.f32 0.044715, %v98_v63  ;;  %v99_v50 = vmul.f32 %v642_v45, %v83_v33  ;;  %v198_v11 = vpack.c.bf16 %v184_v57, %v183_v49  ;;  %v174_v51 = vadd.f32 1.0, %v464_v4 }
  0x22   :  { %467 = vtanh.f32 %v144_v58  ;;  %v129_v12 = vadd.f32 %v422_v39, %v113_v2  ;;  %v189_v13 = vmul.f32 %v173_v5, %v61_v61  ;;  %v100_v15 = vmul.f32 %v649_v60, %v84_v6  ;;  %v444_v58 = vld [vmem:[%s688_s2] ss:$0 sm:$0xff] }
  0x23   :  { %v130_v14 = vadd.f32 %v638_v42, %v114_v3  ;;  %v115_v16 = vmul.f32 0.044715, %v99_v50  ;;  %v187_v9 = vmul.f32 %v171_v34, %v59_v47  ;;  %v188_v17 = vmul.f32 %v172_v1, %v60_v52 }
  0x24   :  { %v190_v18 = vmul.f32 %v174_v51, %v62_v62  ;;  %v145_v19 = vmul.f32 0.7978846, %v129_v12  ;;  %v116_v21 = vmul.f32 0.044715, %v100_v15  ;;  %v63_v10 = vmul.f32 0.5, %v606_v55 }
  0x25   :  { %v146_v20 = vmul.f32 0.7978846, %v130_v14  ;;  %v131_v24 = vadd.f32 %v642_v45, %v115_v16  ;;  %v200_v27 = vpack.c.bf16 %v188_v17, %v187_v9  ;;  %v65_v7 = vmul.f32 0.5, %v422_v39 }
  0x26   :  { %v466_v22 = vpop.eup %465  ;;  %v201_v23 = vpack.c.bf16 %v190_v18, %v189_v13  ;;  %469 = vtanh.f32 %v145_v19  ;;  %v132_v25 = vadd.f32 %v649_v60, %v116_v21  ;;  %v64_v31 = vmul.f32 0.5, %v608_v56 }
  0x27   :  { %471 = vtanh.f32 %v146_v20  ;;  %v147_v28 = vmul.f32 0.7978846, %v131_v24  ;;  %v175_v32 = vadd.f32 1.0, %v466_v22  ;;  %v66_v36 = vmul.f32 0.5, %v638_v42 }
  0x28   :  { %v468_v26 = vpop.eup %467  ;;  %390 = vmatmul.msk.bf16.vlgmr.msra.gmra.mxu2 %vm225_vm0, %v201_v23  ;;  %v148_v29 = vmul.f32 0.7978846, %v132_v25  ;;  %v67_v56 = vmul.f32 0.5, %v642_v45  ;;  %v68_v42 = vmul.f32 0.5, %v649_v60  ;;  %vm344_vm2 = vcmask 1041408  }
  0x29   :  { %v176_v35 = vadd.f32 1.0, %v468_v26  ;;  %473 = vtanh.f32 %v147_v28  ;;  %v191_v8 = vmul.f32 %v175_v32, %v63_v10  ;;  %vm356_vm3 = vcmask 0  }
  0x2a   :  { %475 = vtanh.f32 %v148_v29 }
  0x2b   :  { %v192_v43 = vmul.f32 %v176_v35, %v64_v31 }
  0x2c   :  { %387 = vmatmul.msk.bf16.gmra.mxu0 %vm225_vm0, %v198_v11  ;;  %v470_v30 = vpop.eup %469 }
  0x2d   :  { %v472_v37 = vpop.eup %471  ;;  %v177_v38 = vadd.f32 1.0, %v470_v30  ;;  %v202_v46 = vpack.c.bf16 %v192_v43, %v191_v8 }
  0x2e   :  { %v178_v40 = vadd.f32 1.0, %v472_v37 }
  0x2f   :  { %389 = vmatmul.msk.bf16.gmra.mxu1 %vm225_vm0, %v200_v27  ;;  %v193_v41 = vmul.f32 %v177_v38, %v65_v7  ;;  %v474_v44 = vpop.eup %473 }
  0x30   :  { %v194_v55 = vmul.f32 %v178_v40, %v66_v36  ;;  %v476_v47 = vpop.eup %475  ;;  %v179_v48 = vadd.f32 1.0, %v474_v44  ;;  %v325_v40 = vld [vmem:[%s689_s3] sm:$0x3]  ;;  %s507_s3 = smov [#allocation2]  }
  0x31   :  { %v180_v49 = vadd.f32 1.0, %v476_v47 }
  0x32   :  { %v203_v39 = vpack.c.bf16 %v194_v55, %v193_v41  ;;  %v195_v52 = vmul.f32 %v179_v48, %v67_v56  ;;  %v337_v41 = vlaneseq }
  0x33   :  { %v196_v53 = vmul.f32 %v180_v49, %v68_v42 }
  0x34   :  { %392 = vmatmul.msk.bf16.vlgmr.msra.gmra.mxu3 %vm225_vm0, %v203_v39  ;;  %v338_v55 = vand.u32 127, %v337_v41 }
  0x35   :  { %v204_v54 = vpack.c.bf16 %v196_v53, %v195_v52 }
  0x36   :  { %vm342_vm1 = vcmp.lt.s32.totalorder %v338_v55, 16 }
  0x38   :  { %391 = vmatmul.msk.bf16.gmra.mxu2 %vm225_vm0, %v202_v46 }
  0x44   :  { %393 = vmatmul.msk.bf16.gmra.mxu3 %vm225_vm0, %v204_v54 }
  0x99   :  { %v259_v57 = vpop.f32.mrf.mxu0 }
  0x9a   :  { %v260_v61 = vadd.f32 %v444_v58, %v259_v57 }
  0x9c   :  { %v269_v33 = vpop.f32.mrf.mxu1 }
  0x9d   :  { %v270_v4 = vadd.f32 %v444_v58, %v269_v33 }
  0xa1   :  { %v261_v59 = vpop.f32.mrf.mxu0 }
  0xa2   :  { %v262_v62 = vadd.f32 %v444_v58, %v261_v59 }
  0xa4   :  { %v299_v63 = vpack.c.bf16 %v262_v62, %v260_v61  ;;  %v271_v2 = vpop.f32.mrf.mxu1 }
  0xa5   :  { %v272_v5 = vadd.f32 %v444_v58, %v271_v2 }
  0xa6   :  { %307 = vxpose.xlu0.c.b16.start [1/8] (narrow) %v299_v63, 16 }
  0xa7   :  { %v301_v6 = vpack.c.bf16 %v272_v5, %v270_v4 }
  0xa9   :  { %v264_v45 = vpop.f32.mrf.mxu0 }
  0xaa   :  { %v265_v0 = vadd.f32 %v444_v58, %v264_v45 }
  0xab   :  { %v279_v11 = vpop.f32.mrf.mxu2 }
  0xac   :  { %v274_v3 = vpop.f32.mrf.mxu1  ;;  %v280_v15 = vadd.f32 %v444_v58, %v279_v11 }
  0xad   :  { %v275_v51 = vadd.f32 %v444_v58, %v274_v3 }
  0xb1   :  { %v266_v60 = vpop.f32.mrf.mxu0 }
  0xb2   :  { %v267_v34 = vadd.f32 %v444_v58, %v266_v60 }
  0xb3   :  { %v281_v14 = vpop.f32.mrf.mxu2 }
  0xb4   :  { %v300_v1 = vpack.c.bf16 %v267_v34, %v265_v0  ;;  %v276_v50 = vpop.f32.mrf.mxu1  ;;  %v282_v16 = vadd.f32 %v444_v58, %v281_v14 }
  0xb5   :  { %v277_v12 = vadd.f32 %v444_v58, %v276_v50 }
  0xb6   :  { %308 = vxpose.xlu0.c.b16.cont [2/8] (narrow) %v300_v1, 16  ;;  %v303_v17 = vpack.c.bf16 %v282_v16, %v280_v15 }
  0xb7   :  { %v302_v13 = vpack.c.bf16 %v277_v12, %v275_v51  ;;  %v289_v19 = vpop.f32.mrf.mxu3 }
  0xb8   :  { %v290_v24 = vadd.f32 %v444_v58, %v289_v19 }
  0xbb   :  { %v284_v9 = vpop.f32.mrf.mxu2 }
  0xbc   :  { %v285_v20 = vadd.f32 %v444_v58, %v284_v9 }
  0xbf   :  { %v291_v23 = vpop.f32.mrf.mxu3 }
  0xc0   :  { %v292_v25 = vadd.f32 %v444_v58, %v291_v23 }
  0xc2   :  { %v305_v27 = vpack.c.bf16 %v292_v25, %v290_v24 }
  0xc3   :  { %v286_v18 = vpop.f32.mrf.mxu2 }
  0xc4   :  { %v287_v21 = vadd.f32 %v444_v58, %v286_v18 }
  0xc6   :  { %309 = vxpose.xlu0.c.b16.cont [3/8] (narrow) %v301_v6, 16  ;;  %v304_v22 = vpack.c.bf16 %v287_v21, %v285_v20 }
  0xc7   :  { %v294_v26 = vpop.f32.mrf.mxu3 }
  0xc8   :  { %v295_v10 = vadd.f32 %v444_v58, %v294_v26 }
  0xcf   :  { %v296_v28 = vpop.f32.mrf.mxu3 }
  0xd0   :  { %v297_v7 = vadd.f32 %v444_v58, %v296_v28 }
  0xd2   :  { %v306_v29 = vpack.c.bf16 %v297_v7, %v295_v10 }
  0xd6   :  { %310 = vxpose.xlu0.c.b16.cont [4/8] (narrow) %v302_v13, 16 }
  0xe6   :  { %311 = vxpose.xlu0.c.b16.cont [5/8] (narrow) %v303_v17, 16 }
  0xf6   :  { %312 = vxpose.xlu0.c.b16.cont [6/8] (narrow) %v304_v22, 16 }
 0x106   :  { %313 = vxpose.xlu0.c.b16.cont [7/8] (narrow) %v305_v27, 16 }
 0x116   :  { %314 = vxpose.xlu0.c.b16.end [8/8] (narrow) %v306_v29, 16 }
 0x152   :  { %v315_v30 = vpop.trf.xlu0 }
 0x153   :  { %v323_v31 = vunpack.c.l.bf16 %v315_v30 }
 0x155   :  { %324 = vst [vmem:[%s690_s4] sm:$0x3] %v323_v31  ;;  %v329_v32 = vand.u32 2147483647, %v323_v31  ;;  %v326_v8 = vmax.f32 %v323_v31, 0.0  ;;  %v327_v43 = vmul.f32 %v325_v40, %v323_v31  ;;  %s365_s4 = sshll.u32 %s507_s3, 4  ;;  %s366_s4 = int_to_ptr.vmem [resolvable:$true] %s365_s4 }
 0x157   :  { %v330_v35 = vsub.f32 0.0, %v329_v32  ;;  %v328_v44 = vsub.f32 %v326_v8, %v327_v43 }
 0x159   :  { %v331_v36 = vmul.f32 1.442695, %v330_v35 }
 0x15b   :  { %477 = vpow2.f32 %v331_v36 }
 0x161   :  { %v478_v37 = vpop.eup %477 }
 0x162   :  { %v333_v38 = vadd.f32 1.0, %v478_v37 }
 0x164   :  { %479 = vlog2.f32 %v333_v38 }
 0x16a   :  { %v480_v39 = vpop.eup %479 }
 0x16b   :  { %v335_v46 = vmul.f32 0.6931472, %v480_v39 }
 0x16d   :  { %v336_v47 = vadd.f32 %v335_v46, %v328_v44 }
 0x16f   :  { %v343_v56 = vsel %vm342_vm1, %v336_v47, 0.0 }
 0x170   :  { %v345_v42 = vsel %vm344_vm2, %v343_v56, 0.0 }
 0x171   :  { %346 = vadd.xlane.f32.xlu1 %v345_v42 }
 0x1e4   :  { %v347_v48 = vpop.xlane.xlu1 %346 }
 0x1e5   :  { %v348_v49 = vrot.slane %v347_v48, 4 }
 0x1e7   :  { %v349_v52 = vadd.f32 %v348_v49, %v347_v48 }
 0x1e9   :  { %v350_v53 = vrot.slane %v349_v52, 2 }
 0x1eb   :  { %v351_v54 = vadd.f32 %v350_v53, %v349_v52 }
 0x1ed   :  { %v352_v57 = vrot.slane %v351_v54, 1 }
 0x1ef   :  { %v353_v58 = vadd.f32 %v352_v57, %v351_v54 }
 0x1f1   :  { %441 = vpush %v353_v58 }
 0x222   :  { %s442_s19 = spop %441 }
 0x223   :  { %v355_v59 = vstv %s442_s19 }
 0x224   :  { %357 = vst.msk [vmem:[#allocation2] sm:$0x1] %vm356_vm3, %v355_v59 }
 0x225   :  { %370 = dma.vmem_to_hbm [thread:$0]  %s366_s4, 16, %s368_s18, [#allocation3]  }
 0x226   :  { %505 = dma.done.wait [#allocation3], 16  }
 0x227   :  { %506 = vsyncadd [#allocation3], 4294967280 }
 0x228   :  { %377 = vsyncpa [#allocation3], 1 }

</bundles_post_ra>
